<compile_context>
chip_gen: v7x
topology: tpu7x:2x2x1
jax: 0.10.0
libtpu: 0.0.40
codegen_flags: <defaults>
</compile_context>

<pallas_src>
import functools

import jax
import jax.numpy as jnp
from jax import lax
from jax.experimental import pallas as pl
from jax.experimental.pallas import tpu as pltpu


def _round_up(x, m):
    return (x + m - 1) // m * m


# ----------------------------------------------------------------------------
# Pallas kernel: K-tiled matmul + BN affine + optional residual / fused 1x1
# projection-shortcut matmul / ReLU epilogue.
# ----------------------------------------------------------------------------
def _conv_bn_kernel(*refs, has_residual, has_shortcut, apply_relu, single_k):
    it = iter(refs)
    p_ref = next(it)                                     # (tm, tk)  bf16 patches tile
    w_ref = next(it)                                     # (tk, tn)  bf16 weight tile
    s_ref = next(it)                                     # (1,  tn)  f32 folded-BN scale
    b_ref = next(it)                                     # (1,  tn)  f32 folded-BN bias
    r_ref = next(it) if has_residual else None           # (tm, tn)  f32 residual
    if has_shortcut:
        xc_ref = next(it)                                # (tm, Cin) bf16 strided x
        ws_ref = next(it)                                # (Cin, tn) bf16 1x1 weight
        ss_ref = next(it)                                # (1,  tn)  f32
        bs_ref = next(it)                                # (1,  tn)  f32
    o_ref = next(it)                                     # (tm, tn)  output tile
    acc_ref = None if single_k else next(it)             # (tm, tn)  f32 accumulator

    def epilogue(acc):
        out = acc * s_ref[...] + b_ref[...]
        if has_shortcut:                                  # fused 1x1 projection + BN
            sc = jnp.dot(xc_ref[...], ws_ref[...],
                         preferred_element_type=jnp.float32)
            out = out + (sc * ss_ref[...] + bs_ref[...])
        if has_residual:                                  # identity shortcut
            out = out + r_ref[...]
        if apply_relu:
            out = jnp.maximum(out, 0.0)
        o_ref[...] = out.astype(o_ref.dtype)

    if single_k:
        # One K block: no accumulator round trip through VMEM scratch.
        epilogue(jnp.dot(p_ref[...], w_ref[...],
                         preferred_element_type=jnp.float32))
    else:
        k = pl.program_id(2)

        @pl.when(k == 0)
        def _():
            acc_ref[...] = jnp.zeros_like(acc_ref)

        acc_ref[...] += jnp.dot(p_ref[...], w_ref[...],
                                preferred_element_type=jnp.float32)

        @pl.when(k == pl.num_programs(2) - 1)
        def _():
            epilogue(acc_ref[...])


# ----------------------------------------------------------------------------
# Tiling heuristics
# ----------------------------------------------------------------------------
def _pick_tm(m):
    # Prefer a tile that divides M exactly (no padded patch matrix) and gives
    # >= 2 M-blocks (keeps both v7x TensorCores busy).
    for t in (512, 256, 128, 64, 32, 16, 8):
        if t <= m and m % t == 0 and m // t >= 2:
            return t
    for t in (512, 256, 128, 64, 32, 16, 8):
        if t <= m and m % t == 0:
            return t
    return min(256, _round_up(m, 8))      # rare ragged fallback (boundary masked)


def _pick_tk(k):
    if k <= 512:
        return k                          # single K block, no reduction padding
    for t in (512, 384, 256, 128):        # must divide K exactly (reduction dim)
        if k % t == 0:
            return t
    return k


def _pick_tn(cp):
    return 256 if cp % 256 == 0 else 128  # cp is always a multiple of 128


# ----------------------------------------------------------------------------
# Fused conv-as-matmul stage
# ----------------------------------------------------------------------------
def _fused_conv_stage(patches, w_mat, scale, bias, *, apply_relu,
                      residual=None, shortcut=None, out_dtype=jnp.float32):
    """patches (M,K); w_mat (K,Cp) channel-padded; scale/bias (Cp,) f32;
    residual (M,Cp) f32 or None; shortcut None or dict(x=(M,Cin), w=(Cin,Cp),
    scale=(Cp,), bias=(Cp,)) for an in-epilogue 1x1 projection."""
    M, K = patches.shape
    Cp = w_mat.shape[1]
    has_residual = residual is not None
    has_shortcut = shortcut is not None

    tm, tn, tk = _pick_tm(M), _pick_tn(Cp), _pick_tk(K)
    nk = pl.cdiv(K, tk)
    single_k = nk == 1
    grid = (pl.cdiv(M, tm), Cp // tn, nk)

    inputs = [patches.astype(jnp.bfloat16), w_mat.astype(jnp.bfloat16),
              scale.reshape(1, Cp).astype(jnp.float32),
              bias.reshape(1, Cp).astype(jnp.float32)]
    in_specs = [
        pl.BlockSpec((tm, tk), lambda i, j, k: (i, k)),
        pl.BlockSpec((tk, tn), lambda i, j, k: (k, j)),
        pl.BlockSpec((1, tn), lambda i, j, k: (0, j)),
        pl.BlockSpec((1, tn), lambda i, j, k: (0, j)),
    ]
    bytes_accessed = 2 * M * K + 2 * K * Cp + 8 * Cp
    bytes_accessed += M * Cp * jnp.dtype(out_dtype).itemsize
    flops = 2 * M * K * Cp

    if has_residual:
        inputs.append(residual.astype(jnp.float32))
        in_specs.append(pl.BlockSpec((tm, tn), lambda i, j, k: (i, j)))
        bytes_accessed += 4 * M * Cp
    if has_shortcut:
        cin = shortcut["x"].shape[1]
        inputs += [shortcut["x"].astype(jnp.bfloat16),
                   shortcut["w"].astype(jnp.bfloat16),
                   shortcut["scale"].reshape(1, Cp).astype(jnp.float32),
                   shortcut["bias"].reshape(1, Cp).astype(jnp.float32)]
        in_specs += [
            pl.BlockSpec((tm, cin), lambda i, j, k: (i, 0)),
            pl.BlockSpec((cin, tn), lambda i, j, k: (0, j)),
            pl.BlockSpec((1, tn), lambda i, j, k: (0, j)),
            pl.BlockSpec((1, tn), lambda i, j, k: (0, j)),
        ]
        bytes_accessed += 2 * M * cin + 2 * cin * Cp + 8 * Cp
        flops += 2 * M * cin * Cp

    out_shape = jax.ShapeDtypeStruct((M, Cp), out_dtype)
    out_specs = pl.BlockSpec((tm, tn), lambda i, j, k: (i, j))
    scratch_shapes = [] if single_k else [pltpu.VMEM((tm, tn), jnp.float32)]

    kernel = functools.partial(_conv_bn_kernel, has_residual=has_residual,
                               has_shortcut=has_shortcut, apply_relu=apply_relu,
                               single_k=single_k)

    return pl.pallas_call(
        kernel,
        out_shape=out_shape,
        grid_spec=pltpu.PrefetchScalarGridSpec(
            num_scalar_prefetch=0,
            grid=grid,
            in_specs=in_specs,
            out_specs=out_specs,
            scratch_shapes=scratch_shapes,
        ),
        compiler_params=pltpu.CompilerParams(
            dimension_semantics=("parallel", "parallel", "arbitrary")),
        cost_estimate=pl.CostEstimate(flops=int(flops), transcendentals=0,
                                      bytes_accessed=int(bytes_accessed)),
    )(*inputs)


# ----------------------------------------------------------------------------
# JAX-side glue: im2col, weight reshape/pad, BN folding
# ----------------------------------------------------------------------------
def _im2col(x_nhwc, ksize, stride, pad):
    N, H, W, C = x_nhwc.shape
    Ho = (H + 2 * pad - ksize) // stride + 1
    Wo = (W + 2 * pad - ksize) // stride + 1
    xp = jnp.pad(x_nhwc, ((0, 0), (pad, pad), (pad, pad), (0, 0)))
    cols = []
    for dy in range(ksize):
        for dx in range(ksize):
            cols.append(xp[:, dy:dy + stride * (Ho - 1) + 1:stride,
                           dx:dx + stride * (Wo - 1) + 1:stride, :])
    patches = jnp.concatenate(cols, axis=-1)                 # (N, Ho, Wo, k*k*C)
    return patches.reshape(N * Ho * Wo, ksize * ksize * C), (N, Ho, Wo)


def _weight_to_mat(w_oihw, cp):
    cout, cin, kh, kw = w_oihw.shape
    w = jnp.transpose(w_oihw, (2, 3, 1, 0)).reshape(kh * kw * cin, cout)
    return jnp.pad(w, ((0, 0), (0, cp - cout))).astype(jnp.bfloat16)


def _fold_bn(bn, cp, eps=1e-5):
    gamma, beta, mean, var = bn
    scale = gamma / jnp.sqrt(var + eps)
    bias = beta - mean * scale
    return (jnp.pad(scale, (0, cp - scale.shape[0])).astype(jnp.float32),
            jnp.pad(bias, (0, cp - bias.shape[0])).astype(jnp.float32))


# ----------------------------------------------------------------------------
# BasicBlock forward (NCHW in / NCHW out, like the PyTorch module)
# ----------------------------------------------------------------------------
def basic_block_forward(x_nchw, params, stride):
    x = jnp.transpose(x_nchw, (0, 2, 3, 1)).astype(jnp.float32)   # NCHW -> NHWC
    N, H, W, cin = x.shape
    planes = params["conv1_w"].shape[0]
    cp = _round_up(planes, 128)            # lane-dense (128-aligned) output channels
    x_bf = x.astype(jnp.bfloat16)

    # ---- conv1 (3x3, stride) + BN + ReLU
    patches1, (N, Ho, Wo) = _im2col(x_bf, 3, stride, 1)
    M = N * Ho * Wo
    w1 = _weight_to_mat(params["conv1_w"], cp)
    s1, b1 = _fold_bn(params["bn1"], cp)
    out1 = _fused_conv_stage(patches1, w1, s1, b1, apply_relu=True,
                             out_dtype=jnp.bfloat16)

    # ---- conv2 (3x3, stride 1) + BN + shortcut add + ReLU, fully fused
    h1 = out1[:, :planes].reshape(N, Ho, Wo, planes)              # bf16
    patches2, _ = _im2col(h1, 3, 1, 1)
    w2 = _weight_to_mat(params["conv2_w"], cp)
    s2, b2 = _fold_bn(params["bn2"], cp)

    if "conv_s_w" in params:
        # projection shortcut: fused into conv2's epilogue (no HBM intermediate)
        xs = x_bf[:, ::stride, ::stride, :][:, :Ho, :Wo, :].reshape(M, cin)
        ws = _weight_to_mat(params["conv_s_w"], cp)
        ss, bs = _fold_bn(params["bn_s"], cp)
        out2 = _fused_conv_stage(patches2, w2, s2, b2, apply_relu=True,
                                 shortcut=dict(x=xs, w=ws, scale=ss, bias=bs),
                                 out_dtype=jnp.float32)
    else:
        # identity shortcut (stride==1, cin==planes): residual add in-kernel
        res = jnp.pad(x, ((0, 0), (0, 0), (0, 0), (0, cp - cin))).reshape(M, cp)
        out2 = _fused_conv_stage(patches2, w2, s2, b2, apply_relu=True,
                                 residual=res, out_dtype=jnp.float32)

    out = out2[:, :planes].reshape(N, Ho, Wo, planes)
    return jnp.transpose(out, (0, 3, 1, 2))                       # NHWC -> NCHW


# ----------------------------------------------------------------------------
# Pure-JAX references (lax.conv) for correctness checks
# ----------------------------------------------------------------------------
def _ref_conv(x, w, stride, pad, cast_bf16):
    if cast_bf16:
        x, w = x.astype(jnp.bfloat16), w.astype(jnp.bfloat16)
    return lax.conv_general_dilated(
        x, w, (stride, stride), ((pad, pad), (pad, pad)),
        dimension_numbers=("NCHW", "OIHW", "NCHW"),
        preferred_element_type=jnp.float32)


def _ref_bn(x, bn, eps=1e-5):
    gamma, beta, mean, var = bn
    s = gamma / jnp.sqrt(var + eps)
    return x * s.reshape(1, -1, 1, 1) + (beta - mean * s).reshape(1, -1, 1, 1)


def basic_block_reference(x, params, stride, cast_bf16=False):
    out = jax.nn.relu(_ref_bn(_ref_conv(x, params["conv1_w"], stride, 1, cast_bf16),
                              params["bn1"]))
    if cast_bf16:
        out = out.astype(jnp.bfloat16).astype(jnp.float32)
    out = _ref_bn(_ref_conv(out, params["conv2_w"], 1, 1, cast_bf16), params["bn2"])
    if "conv_s_w" in params:
        sc = _ref_bn(_ref_conv(x, params["conv_s_w"], stride, 0, cast_bf16),
                     params["bn_s"])
    else:
        sc = x
    return jax.nn.relu(out + sc)


def _make_params(key, in_planes, planes, projection):
    ks = jax.random.split(key, 9)
    params = {
        "conv1_w": 0.1 * jax.random.normal(ks[0], (planes, in_planes, 3, 3), jnp.float32),
        "conv2_w": 0.1 * jax.random.normal(ks[1], (planes, planes, 3, 3), jnp.float32),
        # BN params: (gamma, beta, running_mean, running_var) — eval-mode BN
        "bn1": (1.0 + 0.1 * jax.random.normal(ks[2], (planes,), jnp.float32),
                0.05 * jax.random.normal(ks[3], (planes,), jnp.float32),
                0.02 * jax.random.normal(ks[4], (planes,), jnp.float32),
                1.0 + 0.1 * jnp.abs(jax.random.normal(ks[5], (planes,), jnp.float32))),
        "bn2": (1.0 + 0.1 * jax.random.normal(ks[6], (planes,), jnp.float32),
                0.05 * jax.random.normal(ks[7], (planes,), jnp.float32),
                jnp.zeros((planes,), jnp.float32),
                jnp.ones((planes,), jnp.float32)),
    }
    if projection:
        kk = jax.random.split(ks[8], 2)
        params["conv_s_w"] = 0.1 * jax.random.normal(
            kk[0], (planes, in_planes, 1, 1), jnp.float32)
        params["bn_s"] = (jnp.ones((planes,), jnp.float32),
                          jnp.zeros((planes,), jnp.float32),
                          0.02 * jax.random.normal(kk[1], (planes,), jnp.float32),
                          jnp.ones((planes,), jnp.float32))
    return params


# ----------------------------------------------------------------------------
if __name__ == "__main__":
    key = jax.random.PRNGKey(0)
    k_x1, k_p1, k_x2, k_p2, k_mm = jax.random.split(key, 5)

    fwd = jax.jit(basic_block_forward, static_argnames=("stride",))

    # Case 1: projection shortcut (stride=2, in_planes != planes)
    N, in_planes, planes, H, W, stride = 2, 4, 8, 16, 16, 2
    params = _make_params(k_p1, in_planes, planes, projection=True)
    x = jax.random.normal(k_x1, (N, in_planes, H, W), jnp.float32)
    out = jax.block_until_ready(fwd(x, params, stride=stride))
    assert out.shape == (N, planes, H // stride, W // stride)
    ref_bf = basic_block_reference(x, params, stride, cast_bf16=True)
    ref_f32 = basic_block_reference(x, params, stride, cast_bf16=False)
    assert jnp.allclose(out, ref_bf, atol=5e-3, rtol=5e-3)
    assert jnp.allclose(out, ref_f32, atol=5e-2, rtol=5e-2)

    # Case 2: identity shortcut (stride=1, in_planes == planes)
    N2, planes2, H2, W2 = 2, 8, 16, 16
    params2 = _make_params(k_p2, planes2, planes2, projection=False)
    x2 = jax.random.normal(k_x2, (N2, planes2, H2, W2), jnp.float32)
    out2 = jax.block_until_ready(fwd(x2, params2, stride=1))
    assert out2.shape == (N2, planes2, H2, W2)
    ref2_bf = basic_block_reference(x2, params2, 1, cast_bf16=True)
    ref2_f32 = basic_block_reference(x2, params2, 1, cast_bf16=False)
    assert jnp.allclose(out2, ref2_bf, atol=5e-3, rtol=5e-3)
    assert jnp.allclose(out2, ref2_f32, atol=5e-2, rtol=5e-2)

    # Case 3: exercise the K-tiled / multi-N-block matmul path (deep-layer shapes)
    M, K, Cout = 256, 1152, 300
    Cp = _round_up(Cout, 128)
    km = jax.random.split(k_mm, 4)
    p = 0.1 * jax.random.normal(km[0], (M, K), jnp.float32)
    w = 0.05 * jax.random.normal(km[1], (K, Cout), jnp.float32)
    s = 1.0 + 0.1 * jax.random.normal(km[2], (Cout,), jnp.float32)
    b = 0.1 * jax.random.normal(km[3], (Cout,), jnp.float32)
    o = _fused_conv_stage(p, jnp.pad(w, ((0, 0), (0, Cp - Cout))),
                          jnp.pad(s, (0, Cp - Cout)), jnp.pad(b, (0, Cp - Cout)),
                          apply_relu=True, out_dtype=jnp.float32)
    o = jax.block_until_ready(o)[:, :Cout]
    refm = jnp.maximum(jnp.dot(p.astype(jnp.bfloat16), w.astype(jnp.bfloat16),
                               preferred_element_type=jnp.float32) * s + b, 0.0)
    assert jnp.allclose(o, refm, atol=2e-3, rtol=2e-3)

    print("KERNEL_OK")
</pallas_src>

<mosaic_0001>
module attributes {stable_mosaic.version = 11 : i64} {
  func.func @_conv_bn_kernel(%arg0: i32, %arg1: i32, %arg2: i32, %arg3: memref<64x36xbf16, #tpu.memory_space<vmem>>, %arg4: memref<36x128xbf16, #tpu.memory_space<vmem>>, %arg5: memref<1x128xf32, #tpu.memory_space<vmem>>, %arg6: memref<1x128xf32, #tpu.memory_space<vmem>>, %arg7: memref<64x128xbf16, #tpu.memory_space<vmem>>) attributes {dimension_semantics = [#tpu.dimension_semantics<parallel>, #tpu.dimension_semantics<parallel>, #tpu.dimension_semantics<arbitrary>], iteration_bounds = array<i64: 2, 1, 1>, scalar_prefetch = 0 : i64, scratch_operands = 0 : i64, tpu.core_type = #tpu.core_type<tc>, window_params = [{transform_indices = @transform_0, window_bounds = array<i64: 64, 36>}, {transform_indices = @transform_1, window_bounds = array<i64: 36, 128>}, {transform_indices = @transform_2, window_bounds = array<i64: 1, 128>}, {transform_indices = @transform_3, window_bounds = array<i64: 1, 128>}, {transform_indices = @transform_4, window_bounds = array<i64: 64, 128>}]} {
    %c0 = arith.constant 0 : index
    %c0_0 = arith.constant 0 : index
    %0 = vector.load %arg3[%c0, %c0_0] : memref<64x36xbf16, #tpu.memory_space<vmem>>, vector<64x36xbf16>
    %c0_1 = arith.constant 0 : index
    %c0_2 = arith.constant 0 : index
    %1 = vector.load %arg4[%c0_1, %c0_2] : memref<36x128xbf16, #tpu.memory_space<vmem>>, vector<36x128xbf16>
    %cst = arith.constant dense<0.000000e+00> : vector<64x128xf32>
    %2 = tpu.matmul %0, %1, %cst {dimension_numbers = #tpu.dot_dimension_numbers<[1], [0], [0], [1], [0, 0, 1, 1], [], []>} : vector<64x36xbf16>, vector<36x128xbf16>, vector<64x128xf32> -> vector<64x128xf32>
    %c0_3 = arith.constant 0 : index
    %c0_4 = arith.constant 0 : index
    %3 = vector.load %arg5[%c0_3, %c0_4] : memref<1x128xf32, #tpu.memory_space<vmem>>, vector<1x128xf32>
    %4 = vector.broadcast %3 : vector<1x128xf32> to vector<64x128xf32>
    %5 = arith.mulf %2, %4 : vector<64x128xf32>
    %c0_5 = arith.constant 0 : index
    %c0_6 = arith.constant 0 : index
    %6 = vector.load %arg6[%c0_5, %c0_6] : memref<1x128xf32, #tpu.memory_space<vmem>>, vector<1x128xf32>
    %7 = vector.broadcast %6 : vector<1x128xf32> to vector<64x128xf32>
    %8 = arith.addf %5, %7 : vector<64x128xf32>
    %cst_7 = arith.constant 0.000000e+00 : f32
    %9 = vector.broadcast %cst_7 : f32 to vector<64x128xf32>
    %10 = arith.maximumf %8, %9 : vector<64x128xf32>
    %11 = arith.truncf %10 : vector<64x128xf32> to vector<64x128xbf16>
    %c0_8 = arith.constant 0 : index
    %c0_9 = arith.constant 0 : index
    %12 = vector.load %arg7[%c0_8, %c0_9] : memref<64x128xbf16, #tpu.memory_space<vmem>>, vector<64x128xbf16>
    tpu.vector_store %arg7[%c0_8, %c0_9], %11 {strides = array<i32>} : memref<64x128xbf16, #tpu.memory_space<vmem>>, vector<64x128xbf16>,
    return
  }
  func.func @transform_0(%arg0: i32, %arg1: i32, %arg2: i32) -> (i32, i32) {
    %c0_i32 = arith.constant 0 : i32
    return %arg0, %arg2 : i32, i32
  }
  func.func @transform_1(%arg0: i32, %arg1: i32, %arg2: i32) -> (i32, i32) {
    %c0_i32 = arith.constant 0 : i32
    return %arg2, %arg1 : i32, i32
  }
  func.func @transform_2(%arg0: i32, %arg1: i32, %arg2: i32) -> (i32, i32) {
    %c0_i32 = arith.constant 0 : i32
    %c0_i32_0 = arith.constant 0 : i32
    return %c0_i32, %arg1 : i32, i32
  }
  func.func @transform_3(%arg0: i32, %arg1: i32, %arg2: i32) -> (i32, i32) {
    %c0_i32 = arith.constant 0 : i32
    %c0_i32_0 = arith.constant 0 : i32
    return %c0_i32, %arg1 : i32, i32
  }
  func.func @transform_4(%arg0: i32, %arg1: i32, %arg2: i32) -> (i32, i32) {
    %c0_i32 = arith.constant 0 : i32
    return %arg0, %arg1 : i32, i32
  }
}

module attributes {stable_mosaic.version = 11 : i64} {
  func.func @_conv_bn_kernel(%arg0: i32, %arg1: i32, %arg2: i32, %arg3: memref<64x72xbf16, #tpu.memory_space<vmem>>, %arg4: memref<72x128xbf16, #tpu.memory_space<vmem>>, %arg5: memref<1x128xf32, #tpu.memory_space<vmem>>, %arg6: memref<1x128xf32, #tpu.memory_space<vmem>>, %arg7: memref<64x4xbf16, #tpu.memory_space<vmem>>, %arg8: memref<4x128xbf16, #tpu.memory_space<vmem>>, %arg9: memref<1x128xf32, #tpu.memory_space<vmem>>, %arg10: memref<1x128xf32, #tpu.memory_space<vmem>>, %arg11: memref<64x128xf32, #tpu.memory_space<vmem>>) attributes {dimension_semantics = [#tpu.dimension_semantics<parallel>, #tpu.dimension_semantics<parallel>, #tpu.dimension_semantics<arbitrary>], iteration_bounds = array<i64: 2, 1, 1>, scalar_prefetch = 0 : i64, scratch_operands = 0 : i64, tpu.core_type = #tpu.core_type<tc>, window_params = [{transform_indices = @transform_0, window_bounds = array<i64: 64, 72>}, {transform_indices = @transform_1, window_bounds = array<i64: 72, 128>}, {transform_indices = @transform_2, window_bounds = array<i64: 1, 128>}, {transform_indices = @transform_3, window_bounds = array<i64: 1, 128>}, {transform_indices = @transform_4, window_bounds = array<i64: 64, 4>}, {transform_indices = @transform_5, window_bounds = array<i64: 4, 128>}, {transform_indices = @transform_6, window_bounds = array<i64: 1, 128>}, {transform_indices = @transform_7, window_bounds = array<i64: 1, 128>}, {transform_indices = @transform_8, window_bounds = array<i64: 64, 128>}]} {
    %c0 = arith.constant 0 : index
    %c0_0 = arith.constant 0 : index
    %0 = vector.load %arg3[%c0, %c0_0] : memref<64x72xbf16, #tpu.memory_space<vmem>>, vector<64x72xbf16>
    %c0_1 = arith.constant 0 : index
    %c0_2 = arith.constant 0 : index
    %1 = vector.load %arg4[%c0_1, %c0_2] : memref<72x128xbf16, #tpu.memory_space<vmem>>, vector<72x128xbf16>
    %cst = arith.constant dense<0.000000e+00> : vector<64x128xf32>
    %2 = tpu.matmul %0, %1, %cst {dimension_numbers = #tpu.dot_dimension_numbers<[1], [0], [0], [1], [0, 0, 1, 1], [], []>} : vector<64x72xbf16>, vector<72x128xbf16>, vector<64x128xf32> -> vector<64x128xf32>
    %c0_3 = arith.constant 0 : index
    %c0_4 = arith.constant 0 : index
    %3 = vector.load %arg5[%c0_3, %c0_4] : memref<1x128xf32, #tpu.memory_space<vmem>>, vector<1x128xf32>
    %4 = vector.broadcast %3 : vector<1x128xf32> to vector<64x128xf32>
    %5 = arith.mulf %2, %4 : vector<64x128xf32>
    %c0_5 = arith.constant 0 : index
    %c0_6 = arith.constant 0 : index
    %6 = vector.load %arg6[%c0_5, %c0_6] : memref<1x128xf32, #tpu.memory_space<vmem>>, vector<1x128xf32>
    %7 = vector.broadcast %6 : vector<1x128xf32> to vector<64x128xf32>
    %8 = arith.addf %5, %7 : vector<64x128xf32>
    %c0_7 = arith.constant 0 : index
    %c0_8 = arith.constant 0 : index
    %9 = vector.load %arg7[%c0_7, %c0_8] : memref<64x4xbf16, #tpu.memory_space<vmem>>, vector<64x4xbf16>
    %c0_9 = arith.constant 0 : index
    %c0_10 = arith.constant 0 : index
    %10 = vector.load %arg8[%c0_9, %c0_10] : memref<4x128xbf16, #tpu.memory_space<vmem>>, vector<4x128xbf16>
    %cst_11 = arith.constant dense<0.000000e+00> : vector<64x128xf32>
    %11 = tpu.matmul %9, %10, %cst_11 {dimension_numbers = #tpu.dot_dimension_numbers<[1], [0], [0], [1], [0, 0, 1, 1], [], []>} : vector<64x4xbf16>, vector<4x128xbf16>, vector<64x128xf32> -> vector<64x128xf32>
    %c0_12 = arith.constant 0 : index
    %c0_13 = arith.constant 0 : index
    %12 = vector.load %arg9[%c0_12, %c0_13] : memref<1x128xf32, #tpu.memory_space<vmem>>, vector<1x128xf32>
    %13 = vector.broadcast %12 : vector<1x128xf32> to vector<64x128xf32>
    %14 = arith.mulf %11, %13 : vector<64x128xf32>
    %c0_14 = arith.constant 0 : index
    %c0_15 = arith.constant 0 : index
    %15 = vector.load %arg10[%c0_14, %c0_15] : memref<1x128xf32, #tpu.memory_space<vmem>>, vector<1x128xf32>
    %16 = vector.broadcast %15 : vector<1x128xf32> to vector<64x128xf32>
    %17 = arith.addf %14, %16 : vector<64x128xf32>
    %18 = arith.addf %8, %17 : vector<64x128xf32>
    %cst_16 = arith.constant 0.000000e+00 : f32
    %19 = vector.broadcast %cst_16 : f32 to vector<64x128xf32>
    %20 = arith.maximumf %18, %19 : vector<64x128xf32>
    %c0_17 = arith.constant 0 : index
    %c0_18 = arith.constant 0 : index
    %21 = vector.load %arg11[%c0_17, %c0_18] : memref<64x128xf32, #tpu.memory_space<vmem>>, vector<64x128xf32>
    tpu.vector_store %arg11[%c0_17, %c0_18], %20 {strides = array<i32>} : memref<64x128xf32, #tpu.memory_space<vmem>>, vector<64x128xf32>,
    return
  }
  func.func @transform_0(%arg0: i32, %arg1: i32, %arg2: i32) -> (i32, i32) {
    %c0_i32 = arith.constant 0 : i32
    return %arg0, %arg2 : i32, i32
  }
  func.func @transform_1(%arg0: i32, %arg1: i32, %arg2: i32) -> (i32, i32) {
    %c0_i32 = arith.constant 0 : i32
    return %arg2, %arg1 : i32, i32
  }
  func.func @transform_2(%arg0: i32, %arg1: i32, %arg2: i32) -> (i32, i32) {
    %c0_i32 = arith.constant 0 : i32
    %c0_i32_0 = arith.constant 0 : i32
    return %c0_i32, %arg1 : i32, i32
  }
  func.func @transform_3(%arg0: i32, %arg1: i32, %arg2: i32) -> (i32, i32) {
    %c0_i32 = arith.constant 0 : i32
    %c0_i32_0 = arith.constant 0 : i32
    return %c0_i32, %arg1 : i32, i32
  }
  func.func @transform_4(%arg0: i32, %arg1: i32, %arg2: i32) -> (i32, i32) {
    %c0_i32 = arith.constant 0 : i32
    %c0_i32_0 = arith.constant 0 : i32
    return %arg0, %c0_i32 : i32, i32
  }
  func.func @transform_5(%arg0: i32, %arg1: i32, %arg2: i32) -> (i32, i32) {
    %c0_i32 = arith.constant 0 : i32
    %c0_i32_0 = arith.constant 0 : i32
    return %c0_i32, %arg1 : i32, i32
  }
  func.func @transform_6(%arg0: i32, %arg1: i32, %arg2: i32) -> (i32, i32) {
    %c0_i32 = arith.constant 0 : i32
    %c0_i32_0 = arith.constant 0 : i32
    return %c0_i32, %arg1 : i32, i32
  }
  func.func @transform_7(%arg0: i32, %arg1: i32, %arg2: i32) -> (i32, i32) {
    %c0_i32 = arith.constant 0 : i32
    %c0_i32_0 = arith.constant 0 : i32
    return %c0_i32, %arg1 : i32, i32
  }
  func.func @transform_8(%arg0: i32, %arg1: i32, %arg2: i32) -> (i32, i32) {
    %c0_i32 = arith.constant 0 : i32
    return %arg0, %arg1 : i32, i32
  }
}

</mosaic_0001>

<bundles_post_ra>
// kernel: basic_block_forward.3
= control target key start
LH: loop header
LB: loop body
LE: loop exit
PB: predicated region body
PF: predicated region fallthrough
CT: control target
= control target key end

     0   :  { %s1185_s27 = smov 0   ;;  %s1187_s28 = smov 0   ;;  %s1273_s0 = inlined_call_operand.vmem [shape: bf16[128,72], index: 0, kind: input, shape index: {}]   ;;  %s1274_s1 = inlined_call_operand.vmem [shape: bf16[72,128], index: 1, kind: input, shape index: {}]   ;;  %s1275_s2 = inlined_call_operand.vmem [shape: f32[1,128], index: 2, kind: input, shape index: {}]   ;;  %s1276_s3 = inlined_call_operand.vmem [shape: f32[1,128], index: 3, kind: input, shape index: {}]   ;;  %s1277_s4 = inlined_call_operand.vmem [shape: bf16[128,4], index: 4, kind: input, shape index: {}]   ;;  %s1278_s5 = inlined_call_operand.vmem [shape: bf16[4,128], index: 5, kind: input, shape index: {}]   ;;  %s1279_s6 = inlined_call_operand.vmem [shape: f32[1,128], index: 6, kind: input, shape index: {}]   ;;  %s1280_s7 = inlined_call_operand.vmem [shape: f32[1,128], index: 7, kind: input, shape index: {}]   ;;  %s1281_s8 = inlined_call_operand.vmem [shape: f32[128,128], index: 8, kind: output, shape index: {}]  }
   0x1   :  { %s1189_s29 = smov 0  }
   0x2 LB: > { %s37_s30 = sadd.s32 1, %s1134_s28  ;;  %p1001_p0 = scmp.ge.s32.totalorder %s1138_s29, 1  ;;  %s1138_s29 = sphi %s1189_s29, %s18_s29   ;;  %s1134_s28 = sphi %s1187_s28, %s1283_s28   ;;  %s1130_s27 = sphi %s1185_s27, %s1282_s27  }
   0x3   : > { %p39_p1 = scmp.ge.s32.totalorder %s37_s30, 2  ;;  %p357_p2 = scmp.lt.s32.totalorder %s1138_s29, 3 }
   0x5   : > { %s1285_s30 = smov (%p39_p1, %s37_s30), 0  ;;  %p358_p3 = pnand %p1001_p0, %p357_p2 }
   0x6   : > { %v1103_v0 = vld [vmem:[%s1274_s1] sm:$0xff] (!%p358_p3)   ;;  %v1104_v1 = vld [vmem:[%s1274_s1 + $0x8] sm:$0xff] (!%p358_p3)   ;;  %vm694_vm0 = vcmask (!%p358_p3), 1041408   ;;  %s1002_s13 = sshll.u32 (!%p358_p3), %s1130_s27, 3  ;;  %v1105_v2 = vld [vmem:[%s1274_s1 + $0x10] sm:$0xff] (!%p358_p3)   ;;  %vm681_vm1 = vcmask (!%p358_p3), 31744  }
   0x7   : > { %361 = sbr.rel (%p358_p3) target bundleno = 259 (0x103), region = 52  ;;  %1049 = vmatprep.subr.bf16.mxu0 (!%p358_p3), %v1103_v0  ;;  %p427_p4 = scmp.lt.s32.totalorder (!%p358_p3), %s1002_s13, 15  ;;  %v660_v3 = vld [vmem:[%s1278_s5] sm:$0x3] (!%p358_p3)  ;;  %v1106_v5 = vld [vmem:[%s1274_s1 + $0x18] sm:$0xff] (!%p358_p3)   ;;  %vm540_vm2 = vcmask (!%p358_p3), 588800  }
   0x8   : > { %1050 = vmatpush3.bf16.msra.mxu0 (!%p358_p3), %v1103_v0  ;;  %1078 = vmatprep.subr.msk.bf16.mxu1 (!%p358_p3), %vm694_vm0, %v660_v3  ;;  %v696_v4 = vsel (!%p358_p3), %vm694_vm0, %v660_v3, 0  ;;  %v1107_v9 = vld [vmem:[%s1274_s1 + $0x20] ss:$0 sps:$4 sm:$0xff] (!%p358_p3)   ;;  %vm553_vm3 = vcmask (!%p358_p3), 1043456  }
   0x9   : > { %1051 = vmatprep.subr.bf16.mxu0 (!%p358_p3), %v1104_v1  ;;  %1068 = vmatpush3.bf16.msra.mxu1 (!%p358_p3), %v696_v4  ;;  %v555_v11 = vsel (!%p358_p3), %vm553_vm3, %v1107_v9, 0  ;;  %v1031_v20 = vld [vmem:[%s1279_s6] ss:$0 sm:$0xff] (!%p358_p3) }
   0xa   : > { %v1032_v22 = vld [vmem:[%s1280_s7] ss:$0 sm:$0xff] (!%p358_p3) }
   0xb   : > { %v1021_v24 = vld [vmem:[%s1275_s2] ss:$0 sm:$0xff] (!%p358_p3) }
   0xc   : > { %1052 = vmatpush3.bf16.msra.mxu0 (!%p358_p3), %v1104_v1  ;;  %v1022_v28 = vld [vmem:[%s1276_s3] ss:$0 sm:$0xff] (!%p358_p3) }
   0xd   : > { %1053 = vmatprep.subr.bf16.mxu0 (!%p358_p3), %v1105_v2 }
   0xe   : > { %s1287_s13 = smov (!%p427_p4, %s1002_s13), 15 }
   0xf   : > { %s1003_s18 = sshll.u32 %s1287_s13, 2  ;;  %s1007_s19 = sshll.u32 %s1287_s13, 3 }
  0x10   : > { %s454_s23 = scalar_lea.vmem %s1277_s4, %s1003_s18  ;;  %s433_s26 = scalar_lea.vmem %s1273_s0, %s1003_s18  ;;  %1054 = vmatpush3.bf16.msra.mxu0 %v1105_v2 }
  0x11   : > { %v1108_v6 = vld [vmem:[%s454_s23] sm:$0xff]   ;;  %v1109_v7 = vld [vmem:[%s454_s23 + $0x8] sm:$0xff]   ;;  %1055 = vmatprep.subr.bf16.mxu0 %v1106_v5  ;;  %v1112_v10 = vld [vmem:[%s454_s23 + $0x10] sm:$0xff]   ;;  %s1254_s22 = scalar_lea.vmem %s1281_s8, %s1007_s19 }
  0x12   : > { %1069 = vmatprep.mubr.msk.bf16.mxu1 %vm681_vm1, %v1108_v6  ;;  %v1110_v8 = vld [vmem:[%s433_s26] sm:$0xff]   ;;  %v1113_v12 = vld [vmem:[%s454_s23 + $0x18] sm:$0xff]   ;;  %v1111_v13 = vld [vmem:[%s433_s26 + $0x8] sm:$0xff]  }
  0x13   : > { %1070 = vmatmul.mubr.msk.bf16.vlgmr.msra.gmra.mrb[0].mxu1 %vm681_vm1, %v1109_v7  ;;  %1059 = vmatprep.mubr.msk.bf16.mxu0 %vm540_vm2, %v1110_v8  ;;  %v1114_v14 = vld [vmem:[%s433_s26 + $0x10] sm:$0xff]   ;;  %v1115_v15 = vld [vmem:[%s433_s26 + $0x18] sm:$0xff]  }
  0x14   : > { %1056 = vmatpush3.bf16.msra.mxu0 %v1106_v5  ;;  %1073 = vmatprep.mubr.msk.bf16.mxu1 %vm681_vm1, %v1112_v10 }
  0x15   : > { %1077 = vmatprep.subr.msk.bf16.mxu0 %vm553_vm3, %v1107_v9 }
  0x18   : > { %1058 = vmatpush3.bf16.msra.mxu0 %v555_v11 }
  0x1b   : > { %1074 = vmatmul.mubr.msk.bf16.gmra.mrb[4].mxu1 %vm681_vm1, %v1113_v12  ;;  %1060 = vmatmul.mubr.msk.bf16.vlgmr.msra.gmra.mrb[0].mxu0 %vm540_vm2, %v1111_v13 }
  0x1c   : > { %1063 = vmatprep.mubr.msk.bf16.mxu0 %vm540_vm2, %v1114_v14 }
  0x23   : > { %1064 = vmatmul.mubr.msk.bf16.gmra.mrb[4].mxu0 %vm540_vm2, %v1115_v15 }
  0xe6   : > { %v1071_v16 = vpop.f32.mrb[0].mxu1 }
  0xe7   : > { %v732_v17 = vpop.f32.mrb[1].mxu1  ;;  %v772_v21 = vmul.f32 %v1071_v16, %v1031_v20 }
  0xe8   : > { %v1072_v18 = vpop.f32.mrb[2].mxu1  ;;  %v770_v23 = vmul.f32 %v1031_v20, %v732_v17 }
  0xe9   : > { %v735_v19 = vpop.f32.mrb[3].mxu1  ;;  %v787_v30 = vadd.f32 %v1032_v22, %v772_v21  ;;  %v773_v31 = vmul.f32 %v1072_v18, %v1031_v20 }
  0xea   : > { %v785_v35 = vadd.f32 %v1032_v22, %v770_v23  ;;  %v771_v36 = vmul.f32 %v1031_v20, %v735_v19 }
  0xeb   : > { %v788_v44 = vadd.f32 %v1032_v22, %v773_v31 }
  0xec   : > { %v786_v48 = vadd.f32 %v1032_v22, %v771_v36 }
  0xee   : > { %v1075_v25 = vpop.f32.mrb[4].mxu1  ;;  %v1061_v27 = vpop.f32.mrb[0].mxu0 }
  0xef   : > { %v748_v26 = vpop.f32.mrb[5].mxu1  ;;  %v631_v32 = vmul.f32 %v1061_v27, %v1021_v24  ;;  %v591_v33 = vpop.f32.mrb[1].mxu0  ;;  %v776_v47 = vmul.f32 %v1075_v25, %v1031_v20 }
  0xf0   : > { %v1076_v29 = vpop.f32.mrb[6].mxu1  ;;  %v629_v37 = vmul.f32 %v1021_v24, %v591_v33  ;;  %v1062_v38 = vpop.f32.mrb[2].mxu0  ;;  %v774_v51 = vmul.f32 %v1031_v20, %v748_v26 }
  0xf1   : > { %v751_v34 = vpop.f32.mrb[7].mxu1  ;;  %v646_v39 = vadd.f32 %v1022_v28, %v631_v32  ;;  %v632_v40 = vmul.f32 %v1062_v38, %v1021_v24  ;;  %v594_v41 = vpop.f32.mrb[3].mxu0  ;;  %v791_v58 = vadd.f32 %v1032_v22, %v776_v47  ;;  %v777_v59 = vmul.f32 %v1076_v29, %v1031_v20 }
  0xf2   : > { %v644_v42 = vadd.f32 %v1022_v28, %v629_v37  ;;  %v630_v43 = vmul.f32 %v1021_v24, %v594_v41  ;;  %v789_v63 = vadd.f32 %v1032_v22, %v774_v51  ;;  %v775_v0 = vmul.f32 %v1031_v20, %v751_v34 }
  0xf3   : > { %v795_v45 = vadd.f32 %v787_v30, %v646_v39  ;;  %v647_v46 = vadd.f32 %v1022_v28, %v632_v40  ;;  %v792_v8 = vadd.f32 %v1032_v22, %v777_v59 }
  0xf4   : > { %v793_v49 = vadd.f32 %v785_v35, %v644_v42  ;;  %v645_v50 = vadd.f32 %v1022_v28, %v630_v43  ;;  %v790_v11 = vadd.f32 %v1032_v22, %v775_v0 }
  0xf5   : > { %v803_v52 = vmax.f32 %v795_v45, 0.0  ;;  %v796_v53 = vadd.f32 %v788_v44, %v647_v46 }
  0xf6   : > { %v801_v54 = vmax.f32 %v793_v49, 0.0  ;;  %v794_v55 = vadd.f32 %v786_v48, %v645_v50  ;;  %v1065_v56 = vpop.f32.mrb[4].mxu0 }
  0xf7   : > { %811 = vst [vmem:[%s1254_s22 + $0x10] sm:$0xff] %v803_v52  ;;  %v804_v57 = vmax.f32 %v796_v53, 0.0  ;;  %v635_v60 = vmul.f32 %v1065_v56, %v1021_v24  ;;  %v607_v61 = vpop.f32.mrb[5].mxu0 }
  0xf8   : > { %809 = vst [vmem:[%s1254_s22] sm:$0xff] %v801_v54  ;;  %v802_v62 = vmax.f32 %v794_v55, 0.0  ;;  %v633_v1 = vmul.f32 %v1021_v24, %v607_v61  ;;  %v1066_v2 = vpop.f32.mrb[6].mxu0 }
  0xf9   : > { %812 = vst [vmem:[%s1254_s22 + $0x18] sm:$0xff] %v804_v57  ;;  %v650_v3 = vadd.f32 %v1022_v28, %v635_v60  ;;  %v636_v4 = vmul.f32 %v1066_v2, %v1021_v24  ;;  %v610_v5 = vpop.f32.mrb[7].mxu0 }
  0xfa   : > { %810 = vst [vmem:[%s1254_s22 + $0x8] sm:$0xff] %v802_v62  ;;  %v648_v6 = vadd.f32 %v1022_v28, %v633_v1  ;;  %v634_v7 = vmul.f32 %v1021_v24, %v610_v5 }
  0xfb   : > { %v799_v9 = vadd.f32 %v791_v58, %v650_v3  ;;  %v651_v10 = vadd.f32 %v1022_v28, %v636_v4 }
  0xfc   : > { %v797_v12 = vadd.f32 %v789_v63, %v648_v6  ;;  %v649_v13 = vadd.f32 %v1022_v28, %v634_v7 }
  0xfd   : > { %v807_v14 = vmax.f32 %v799_v9, 0.0  ;;  %v800_v15 = vadd.f32 %v792_v8, %v651_v10 }
  0xfe   : > { %v805_v16 = vmax.f32 %v797_v12, 0.0  ;;  %v798_v17 = vadd.f32 %v790_v11, %v649_v13 }
  0xff   : > { %815 = vst [vmem:[%s1254_s22 + $0x30] sm:$0xff] %v807_v14  ;;  %v808_v18 = vmax.f32 %v800_v15, 0.0 }
 0x100   : > { %813 = vst [vmem:[%s1254_s22 + $0x20] sm:$0xff] %v805_v16  ;;  %v806_v19 = vmax.f32 %v798_v17, 0.0 }
 0x101   : > { %816 = vst [vmem:[%s1254_s22 + $0x38] sm:$0xff] %v808_v18 }
 0x102   : > { %814 = vst [vmem:[%s1254_s22 + $0x28] sm:$0xff] %v806_v19 }
 0x103 PF: > { %s18_s29 = sadd.s32 1, %s1138_s29   ;;  %s1282_s27 = smov %s1134_s28 }
 0x104   : > { %p15_p5 = scmp.ge.s32.totalorder %s18_s29, 4   ;;  %s1283_s28 = smov %s1285_s30 }
 0x106   :  { %17 = sbr.rel (!%p15_p5) target bundleno = 2 (0x2), region = 103 }

// kernel: basic_block_forward.2
= control target key start
LH: loop header
LB: loop body
LE: loop exit
PB: predicated region body
PF: predicated region fallthrough
CT: control target
= control target key end

     0   :  { %s807_s15 = smov 0   ;;  %s809_s16 = smov 0   ;;  %s862_s0 = inlined_call_operand.vmem [shape: bf16[128,36], index: 0, kind: input, shape index: {}]   ;;  %s863_s1 = inlined_call_operand.vmem [shape: bf16[36,128], index: 1, kind: input, shape index: {}]   ;;  %s864_s2 = inlined_call_operand.vmem [shape: f32[1,128], index: 2, kind: input, shape index: {}]   ;;  %s865_s3 = inlined_call_operand.vmem [shape: f32[1,128], index: 3, kind: input, shape index: {}]   ;;  %s866_s4 = inlined_call_operand.vmem [shape: bf16[128,128], index: 4, kind: output, shape index: {}]  }
   0x1   :  { %s811_s17 = smov 0  }
   0x2 LB: > { %s33_s18 = sadd.s32 1, %s776_s16  ;;  %p639_p0 = scmp.ge.s32.totalorder %s780_s17, 1  ;;  %s780_s17 = sphi %s811_s17, %s14_s17   ;;  %s776_s16 = sphi %s809_s16, %s868_s16   ;;  %s772_s15 = sphi %s807_s15, %s867_s15  }
   0x3   : > { %p35_p1 = scmp.ge.s32.totalorder %s33_s18, 2  ;;  %p221_p2 = scmp.lt.s32.totalorder %s780_s17, 3 }
   0x5   : > { %s870_s18 = smov (%p35_p1, %s33_s18), 0  ;;  %p222_p3 = pnand %p639_p0, %p221_p2 }
   0x6   : > { %v751_v0 = vld [vmem:[%s863_s1] sm:$0xff] (!%p222_p3)   ;;  %v752_v1 = vld [vmem:[%s863_s1 + $0x8] sm:$0xff] (!%p222_p3)   ;;  %s640_s23 = sshll.u32 (!%p222_p3), %s772_s15, 3  ;;  %v753_v2 = vld [vmem:[%s863_s1 + $0x10] ss:$0 sps:$4 sm:$0x33] (!%p222_p3)  }
   0x7   : > { %225 = sbr.rel (%p222_p3) target bundleno = 243 (0xf3), region = 36  ;;  %705 = vmatprep.subr.bf16.mxu0 (!%p222_p3), %v751_v0  ;;  %719 = vmatprep.subr.bf16.mxu1 (!%p222_p3), %v751_v0  ;;  %p268_p4 = scmp.lt.s32.totalorder (!%p222_p3), %s640_s23, 15  ;;  %vm362_vm0 = vcmask (!%p222_p3), 1041408   ;;  %vm349_vm1 = vcmask (!%p222_p3), 293888   ;;  %v655_v8 = vld [vmem:[%s864_s2] ss:$0 sm:$0xff] (!%p222_p3) }
   0x8   : > { %706 = vmatpush3.bf16.msra.mxu0 (!%p222_p3), %v751_v0  ;;  %722 = vmatpush3.bf16.msra.mxu1 (!%p222_p3), %v751_v0  ;;  %v364_v3 = vsel (!%p222_p3), %vm362_vm0, %v753_v2, 0  ;;  %v656_v10 = vld [vmem:[%s865_s3] ss:$0 sm:$0xff] (!%p222_p3) }
   0x9   : > { %707 = vmatprep.subr.bf16.mxu0 (!%p222_p3), %v752_v1  ;;  %720 = vmatprep.subr.bf16.mxu1 (!%p222_p3), %v752_v1 }
   0xc   : > { %708 = vmatpush3.bf16.msra.mxu0 (!%p222_p3), %v752_v1  ;;  %723 = vmatpush3.bf16.msra.mxu1 (!%p222_p3), %v752_v1 }
   0xd   : > { %725 = vmatprep.subr.msk.bf16.mxu0 (!%p222_p3), %vm362_vm0, %v753_v2  ;;  %726 = vmatprep.subr.msk.bf16.mxu1 (!%p222_p3), %vm362_vm0, %v753_v2 }
   0xe   : > { %s872_s23 = smov (!%p268_p4, %s640_s23), 15 }
   0xf   : > { %s641_s26 = sshll.u32 %s872_s23, 2 }
  0x10   : > { %s274_s29 = scalar_lea.vmem %s862_s0, %s641_s26  ;;  %710 = vmatpush3.bf16.msra.mxu0 %v364_v3  ;;  %724 = vmatpush3.bf16.msra.mxu1 %v364_v3  ;;  %s298_s10 = scalar_lea.vmem %s866_s4, %s641_s26 }
  0x11   : > { %v754_v4 = vld [vmem:[%s274_s29] sm:$0xff]   ;;  %v755_v5 = vld [vmem:[%s274_s29 + $0x10] sm:$0xff]   ;;  %v756_v6 = vld [vmem:[%s274_s29 + $0x8] sm:$0xff]  }
  0x12   : > { %711 = vmatprep.mubr.msk.bf16.mxu0 %vm349_vm1, %v754_v4  ;;  %v757_v7 = vld [vmem:[%s274_s29 + $0x18] sm:$0xff]   ;;  %715 = vmatprep.mubr.msk.bf16.mxu1 %vm349_vm1, %v755_v5 }
  0x13   : > { %712 = vmatmul.mubr.msk.bf16.vlgmr.msra.gmra.mrb[0].mxu0 %vm349_vm1, %v756_v6  ;;  %716 = vmatmul.mubr.msk.bf16.vlgmr.msra.gmra.mrb[0].mxu1 %vm349_vm1, %v757_v7 }
  0xe6   : > { %v713_v9 = vpop.f32.mrb[0].mxu0  ;;  %v717_v11 = vpop.f32.mrb[0].mxu1 }
  0xe7   : > { %v440_v12 = vmul.f32 %v713_v9, %v655_v8  ;;  %v444_v13 = vmul.f32 %v717_v11, %v655_v8  ;;  %v400_v14 = vpop.f32.mrb[1].mxu0  ;;  %v416_v15 = vpop.f32.mrb[1].mxu1 }
  0xe8   : > { %v438_v16 = vmul.f32 %v655_v8, %v400_v14  ;;  %v442_v17 = vmul.f32 %v655_v8, %v416_v15  ;;  %v714_v18 = vpop.f32.mrb[2].mxu0  ;;  %v718_v19 = vpop.f32.mrb[2].mxu1 }
  0xe9   : > { %v455_v20 = vadd.f32 %v656_v10, %v440_v12  ;;  %v459_v21 = vadd.f32 %v656_v10, %v444_v13  ;;  %v441_v22 = vmul.f32 %v714_v18, %v655_v8  ;;  %v445_v23 = vmul.f32 %v718_v19, %v655_v8  ;;  %v403_v24 = vpop.f32.mrb[3].mxu0  ;;  %v419_v25 = vpop.f32.mrb[3].mxu1 }
  0xea   : > { %v453_v26 = vadd.f32 %v656_v10, %v438_v16  ;;  %v457_v27 = vadd.f32 %v656_v10, %v442_v17  ;;  %v439_v28 = vmul.f32 %v655_v8, %v403_v24  ;;  %v443_v29 = vmul.f32 %v655_v8, %v419_v25 }
  0xeb   : > { %v456_v30 = vadd.f32 %v656_v10, %v441_v22  ;;  %v460_v31 = vadd.f32 %v656_v10, %v445_v23  ;;  %v463_v34 = vmax.f32 %v455_v20, 0.0  ;;  %v467_v35 = vmax.f32 %v459_v21, 0.0 }
  0xec   : > { %v454_v32 = vadd.f32 %v656_v10, %v439_v28  ;;  %v458_v33 = vadd.f32 %v656_v10, %v443_v29  ;;  %v461_v38 = vmax.f32 %v453_v26, 0.0  ;;  %v465_v39 = vmax.f32 %v457_v27, 0.0 }
  0xed   : > { %v464_v36 = vmax.f32 %v456_v30, 0.0  ;;  %v468_v37 = vmax.f32 %v460_v31, 0.0 }
  0xee   : > { %v462_v40 = vmax.f32 %v454_v32, 0.0  ;;  %v466_v41 = vmax.f32 %v458_v33, 0.0 }
  0xef   : > { %v683_v42 = vpack.c.bf16 %v464_v36, %v463_v34  ;;  %v693_v43 = vpack.c.bf16 %v468_v37, %v467_v35 }
  0xf0   : > { %v678_v44 = vpack.c.bf16 %v462_v40, %v461_v38  ;;  %v688_v45 = vpack.c.bf16 %v466_v41, %v465_v39 }
  0xf1   : > { %695 = vst [vmem:[%s298_s10 + $0x8] sm:$0xff] %v683_v42   ;;  %697 = vst [vmem:[%s298_s10 + $0x18] sm:$0xff] %v693_v43  }
  0xf2   : > { %679 = vst [vmem:[%s298_s10] sm:$0xff] %v678_v44   ;;  %696 = vst [vmem:[%s298_s10 + $0x10] sm:$0xff] %v688_v45  }
  0xf3 PF: > { %s14_s17 = sadd.s32 1, %s780_s17   ;;  %s867_s15 = smov %s776_s16 }
  0xf4   : > { %p11_p5 = scmp.ge.s32.totalorder %s14_s17, 4   ;;  %s868_s16 = smov %s870_s18 }
  0xf6   :  { %13 = sbr.rel (!%p11_p5) target bundleno = 2 (0x2), region = 75 }

</bundles_post_ra>
